<compile_context>
chip_gen: v7x
topology: tpu7x:2x2x1
jax: 0.10.0
libtpu: 0.0.40
codegen_flags: <defaults>
</compile_context>

<pallas_src>
import math

import jax
import jax.numpy as jnp
from jax import lax
from jax.experimental import pallas as pl
from jax.experimental.pallas import tpu as pltpu


def _make_mru_kernel(Bb, D, W, Tt, grid_n):
    """Bb: batch rows per chunk (mult of 8); D: feat dim; W: window;
    Tt: timesteps per block; grid_n: number of real time blocks."""
    half = W // 2
    inv_sqrt_d = 1.0 / math.sqrt(D)

    def kernel(x_ref, wcat_ref, wg2_ref, bm_ref, bg_ref, o_ref,
               prev_ref, xhalo_ref, xw2_ref, pmlp_ref, pgate_ref):
        # x_ref    : (Tt*Bb, D)            incoming time block (time-major, batch-flat)
        # wcat_ref : (W*D, 2D)             [W_mlp | W_gate(window part)] (in, out)
        # wg2_ref  : (D, D)                gate weight acting on the attended state
        # bm_ref, bg_ref : (1, D)          biases (f32)
        # o_ref    : (Tt*Bb, D)            output slab for the *previous* time block
        # prev_ref : (Bb, D)               recurrent state carry
        # xhalo_ref: ((Tt+2*half)*Bb, D)   halo'd slab carried across grid steps
        # xw2_ref  : ((Tt+2*half)*Bb, D)   hoisted xhalo @ wg2
        # pmlp_ref, pgate_ref : (Tt*Bb, D) hoisted prev-independent linear terms
        i = pl.program_id(1)   # time-block index (pipeline delayed by one step)

        # ---------------- i == 0 : prologue for this batch chunk ----------------
        @pl.when(i == 0)
        def _prologue():
            prev_ref[...] = jnp.zeros_like(prev_ref)
            if half:
                xhalo_ref[0:half * Bb, :] = jnp.zeros((half * Bb, D), xhalo_ref.dtype)
            xhalo_ref[half * Bb:(half + Tt) * Bb, :] = x_ref[...]

        # ---------------- i > 0 : compute time block i-1 ----------------
        @pl.when(i > 0)
        def _compute():
            # Complete the halo: right halo = first `half` timesteps of the
            # incoming block (zeros past the end of the sequence).
            if half:
                xhalo_ref[(half + Tt) * Bb:(2 * half + Tt) * Bb, :] = x_ref[0:half * Bb, :]

            wcat = wcat_ref[...]
            wg2 = wg2_ref[...]
            bm = bm_ref[...]
            bg = bg_ref[...]

            # ---------------- Phase A: all MXU work (prev-independent) ----------
            # Hoisted attended-state gate weight: ps @ wg2 will be rebuilt in
            # Phase B from these rows with pure scale-adds.
            xw2_ref[...] = jnp.dot(xhalo_ref[...], wg2,
                                   preferred_element_type=jnp.float32)

            # Fused window linear: one matmul per window slot over a contiguous
            # statically-sliced slab of the halo'd input (conv-as-matmul).
            acc = None
            for k in range(W):                                    # static, small
                s_k = xhalo_ref[k * Bb:(k + Tt) * Bb, :]           # (Tt*Bb, D)
                p = jnp.dot(s_k, wcat[k * D:(k + 1) * D, :],
                            preferred_element_type=jnp.float32)    # (Tt*Bb, 2D)
                acc = p if acc is None else acc + p
            pmlp_ref[...] = acc[:, :D] + bm
            pgate_ref[...] = acc[:, D:] + bg

            # Left-boundary fixup (first computed block of every batch chunk):
            # the reference packs the first `half` windows left-aligned with
            # zeros at the END, which matters for the slot-order-sensitive
            # flattened-window matmuls (attention itself is slot-invariant).
            if half:
                @pl.when(i == 1)
                def _fixup():
                    for j in range(half):                          # static, tiny
                        a = None
                        for k in range(j + half + 1):              # valid slots only
                            row = xhalo_ref[(half + k) * Bb:(half + k + 1) * Bb, :]
                            p = jnp.dot(row, wcat[k * D:(k + 1) * D, :],
                                        preferred_element_type=jnp.float32)
                            a = p if a is None else a + p
                        pmlp_ref[j * Bb:(j + 1) * Bb, :] = a[:, :D] + bm
                        pgate_ref[j * Bb:(j + 1) * Bb, :] = a[:, D:] + bg

            # ---------------- Phase B: the irreducibly sequential recurrence ----
            # fori_loop keeps register pressure flat for large Tt; only the tiny
            # W loop is unrolled.  No MXU op on this chain (VPU/EUP/XLU only).
            def step(j, prev):
                base = pl.multiple_of(j * Bb, 8)
                rows, w2rows = [], []
                for k in range(W):
                    off = base + k * Bb
                    rows.append(xhalo_ref[pl.ds(off, Bb), :].astype(jnp.float32))
                    w2rows.append(xw2_ref[pl.ds(off, Bb), :])

                scores = [jnp.sum(prev * r, axis=1, keepdims=True) * inv_sqrt_d
                          for r in rows]                           # W x (Bb, 1)
                m = scores[0]
                for s in scores[1:]:
                    m = jnp.maximum(m, s)
                es = [jnp.exp(s - m) for s in scores]
                denom = es[0]
                for e in es[1:]:
                    denom = denom + e
                inv = pl.reciprocal(denom, approx=True)            # EUP slot

                num = es[0] * rows[0]
                numw2 = es[0] * w2rows[0]
                for k in range(1, W):
                    num = num + es[k] * rows[k]
                    numw2 = numw2 + es[k] * w2rows[k]
                ps = num * inv                                      # attended state
                gate = jax.nn.sigmoid(pgate_ref[pl.ds(base, Bb), :] + numw2 * inv)
                out = pmlp_ref[pl.ds(base, Bb), :] + ps * gate
                o_ref[pl.ds(base, Bb), :] = out
                return out

            prev_ref[...] = lax.fori_loop(0, Tt, step, prev_ref[...])

            # Stage the next block: new left halo = trailing `half` timesteps of
            # the block just consumed; new body = the incoming block.
            @pl.when(i < grid_n)
            def _advance():
                if half:
                    tail = xhalo_ref[Tt * Bb:(Tt + half) * Bb, :]
                    xhalo_ref[0:half * Bb, :] = tail
                xhalo_ref[half * Bb:(half + Tt) * Bb, :] = x_ref[...]

    return kernel


def mru_pallas(x_btd, w_mlp, b_mlp, w_gate, b_gate, window_size,
               block_t=None, block_b=None, mxu_dtype=jnp.float32):
    """MRU forward.

    x_btd : (B, T, D) float32
    w_mlp : (D, W*D)      torch Linear weight (out, in)
    b_mlp : (D,)
    w_gate: (D, (W+1)*D)  torch Linear weight (out, in)
    b_gate: (D,)
    """
    B, T, D = x_btd.shape
    W = int(window_size)
    assert W >= 1 and W % 2 == 1, "odd window sizes only (as in the reference)"
    half = W // 2

    if block_t is None:
        block_t = min(T, 256)             # large blocks amortize grid overhead
    block_t = max(int(block_t), max(1, half))
    grid_n = pl.cdiv(T, block_t)
    nsteps = grid_n + 1                   # +1: one-step-delayed halo pipeline
    T_pad = grid_n * block_t

    if block_b is None:
        block_b = min(-(-B // 8) * 8, 128)
    block_b = max(8, ((int(block_b) + 7) // 8) * 8)
    NB = -(-B // block_b)
    Bp = NB * block_b

    # Layout plumbing: time-major, batch-chunked, zero-padded, plus ONE extra
    # zero time block so the last real block's right halo exists.  There is no
    # halo-duplicating gather: the halo is carried across grid steps in VMEM.
    x_tbd = jnp.transpose(x_btd, (1, 0, 2)).astype(jnp.float32)        # (T, B, D)
    xpad = jnp.pad(x_tbd, ((0, nsteps * block_t - T), (0, Bp - B), (0, 0)))
    x_in = xpad.reshape(nsteps, block_t, NB, block_b, D)
    x_in = jnp.transpose(x_in, (2, 0, 1, 3, 4))
    x_in = x_in.reshape(NB * nsteps * block_t * block_b, D).astype(mxu_dtype)

    # torch (out, in) -> (in, out).  Fuse [W_mlp | W_gate(window part)] along
    # the output axis so Phase A does a single matmul per window slot; the
    # gate's attended-state part is hoisted to one matmul over the halo'd slab.
    wm_t = jnp.transpose(w_mlp).astype(jnp.float32)                    # (W*D, D)
    wg_t = jnp.transpose(w_gate).astype(jnp.float32)                   # ((W+1)*D, D)
    wcat = jnp.concatenate([wm_t, wg_t[:W * D, :]], axis=1).astype(mxu_dtype)
    wg2 = wg_t[W * D:, :].astype(mxu_dtype)
    bm = b_mlp.reshape(1, D).astype(jnp.float32)
    bg = b_gate.reshape(1, D).astype(jnp.float32)

    kernel = _make_mru_kernel(block_b, D, W, block_t, grid_n)
    R = block_t + 2 * half

    out_flat = pl.pallas_call(
        kernel,
        out_shape=jax.ShapeDtypeStruct((NB * T_pad * block_b, D), jnp.float32),
        grid_spec=pltpu.PrefetchScalarGridSpec(
            num_scalar_prefetch=0,
            grid=(NB, nsteps),
            in_specs=[
                pl.BlockSpec((block_t * block_b, D),
                             lambda b, i: (b * nsteps + i, 0)),        # streamed x
                pl.BlockSpec((W * D, 2 * D), lambda b, i: (0, 0)),     # fused weights
                pl.BlockSpec((D, D), lambda b, i: (0, 0)),             # gate ps-weight
                pl.BlockSpec((1, D), lambda b, i: (0, 0)),
                pl.BlockSpec((1, D), lambda b, i: (0, 0)),
            ],
            out_specs=pl.BlockSpec(
                (block_t * block_b, D),
                lambda b, i: (b * grid_n + jnp.maximum(i - 1, 0), 0)),
            scratch_shapes=[
                pltpu.VMEM((block_b, D), jnp.float32),             # recurrent state
                pltpu.VMEM((R * block_b, D), mxu_dtype),           # carried halo slab
                pltpu.VMEM((R * block_b, D), jnp.float32),         # hoisted xhalo @ wg2
                pltpu.VMEM((block_t * block_b, D), jnp.float32),   # hoisted MLP term
                pltpu.VMEM((block_t * block_b, D), jnp.float32),   # hoisted gate-window term
            ],
        ),
        compiler_params=pltpu.CompilerParams(
            # batch chunks are independent (megacore-splittable on v7x);
            # the time axis carries the recurrence and halo -> sequential.
            dimension_semantics=("parallel", "arbitrary"),
            vmem_limit_bytes=32 * 1024 * 1024,
        ),
    )(x_in, wcat, wg2, bm, bg)

    out = out_flat.reshape(NB, T_pad, block_b, D)
    out = jnp.transpose(out, (0, 2, 1, 3)).reshape(Bp, T_pad, D)
    return out[:B, :T, :]


def mru_reference(x, w_mlp, b_mlp, w_gate, b_gate, W):
    """Pure-JAX transliteration of the PyTorch forward (for validation)."""
    B, T, D = x.shape
    half = W // 2
    prev = jnp.zeros((B, D), jnp.float32)
    outs = []
    for t in range(T):
        idxs = sorted(
            [t - u for u in range(1, half + 1) if t - u >= 0]
            + [t + u for u in range(1, half + 1) if t + u <= T - 1]
            + [t]
        )
        sub = x[:, jnp.array(idxs), :]
        if len(idxs) < W:
            sub = jnp.concatenate(
                [sub, jnp.zeros((B, W - len(idxs), D), jnp.float32)], axis=1
            )
        scores = jnp.einsum("bd,bwd->bw", prev, sub) / math.sqrt(D)
        probs = jax.nn.softmax(scores, axis=-1)
        ps = jnp.einsum("bw,bwd->bd", probs, sub)
        temp1 = sub.reshape(B, W * D)
        temp2 = jnp.concatenate([sub, ps[:, None, :]], axis=1).reshape(B, (W + 1) * D)
        mlp = temp1 @ w_mlp.T + b_mlp
        gate = jax.nn.sigmoid(temp2 @ w_gate.T + b_gate)
        out = mlp + ps * gate
        prev = out
        outs.append(out)
    return jnp.stack(outs, axis=1)


if __name__ == "__main__":
    B, T, D, W = 2, 8, 32, 3  # hidden_dim = feat_dim = 32, odd window

    key = jax.random.PRNGKey(0)
    kx, k1, k2, k3, k4 = jax.random.split(key, 5)

    x = jax.random.normal(kx, (B, T, D), dtype=jnp.float32)

    # Deterministic parameter init (uniform in +-1/sqrt(fan_in), torch-Linear-like).
    bnd_m = 1.0 / math.sqrt(W * D)
    bnd_g = 1.0 / math.sqrt((W + 1) * D)
    w_mlp = jax.random.uniform(k1, (D, W * D), jnp.float32, -bnd_m, bnd_m)
    b_mlp = jax.random.uniform(k2, (D,), jnp.float32, -bnd_m, bnd_m)
    w_gate = jax.random.uniform(k3, (D, (W + 1) * D), jnp.float32, -bnd_g, bnd_g)
    b_gate = jax.random.uniform(k4, (D,), jnp.float32, -bnd_g, bnd_g)

    ref = mru_reference(x, w_mlp, b_mlp, w_gate, b_gate, W)

    # Single-time-block path (default block_t covers all of T here).
    out = mru_pallas(x, w_mlp, b_mlp, w_gate, b_gate, W)
    out = jax.block_until_ready(out)
    assert out.shape == (B, T, D)
    err = float(jnp.max(jnp.abs(out - ref)))
    # Slightly looser tolerance than exact-f32: the softmax denominator uses
    # the EUP approximate reciprocal and summation order differs from torch.
    assert err < 5e-3, f"max abs err (single block) = {err}"

    # Multi-block path: exercises the VMEM-carried halo across time blocks and
    # T not divisible by block_t (trailing padded timesteps are sliced off).
    out2 = mru_pallas(x, w_mlp, b_mlp, w_gate, b_gate, W, block_t=3)
    out2 = jax.block_until_ready(out2)
    err2 = float(jnp.max(jnp.abs(out2 - ref)))
    assert err2 < 5e-3, f"max abs err (multi block) = {err2}"

    print("KERNEL_OK")
</pallas_src>

<mosaic_0001>
module attributes {stable_mosaic.version = 11 : i64} {
  func.func @kernel(%arg0: i32, %arg1: i32, %arg2: memref<64x32xf32, #tpu.memory_space<vmem>>, %arg3: memref<96x64xf32, #tpu.memory_space<vmem>>, %arg4: memref<32x32xf32, #tpu.memory_space<vmem>>, %arg5: memref<1x32xf32, #tpu.memory_space<vmem>>, %arg6: memref<1x32xf32, #tpu.memory_space<vmem>>, %arg7: memref<64x32xf32, #tpu.memory_space<vmem>>, %arg8: memref<8x32xf32, #tpu.memory_space<vmem>>, %arg9: memref<80x32xf32, #tpu.memory_space<vmem>>, %arg10: memref<80x32xf32, #tpu.memory_space<vmem>>, %arg11: memref<64x32xf32, #tpu.memory_space<vmem>>, %arg12: memref<64x32xf32, #tpu.memory_space<vmem>>) attributes {dimension_semantics = [#tpu.dimension_semantics<parallel>, #tpu.dimension_semantics<arbitrary>], iteration_bounds = array<i64: 1, 2>, scalar_prefetch = 0 : i64, scratch_operands = 5 : i64, tpu.core_type = #tpu.core_type<tc>, window_params = [{transform_indices = @transform_0, window_bounds = array<i64: 64, 32>}, {pipeline_mode = #tpu.pipeline_mode<synchronous>, transform_indices = @transform_1, window_bounds = array<i64: 96, 64>}, {pipeline_mode = #tpu.pipeline_mode<synchronous>, transform_indices = @transform_2, window_bounds = array<i64: 32, 32>}, {pipeline_mode = #tpu.pipeline_mode<synchronous>, transform_indices = @transform_3, window_bounds = array<i64: 1, 32>}, {pipeline_mode = #tpu.pipeline_mode<synchronous>, transform_indices = @transform_4, window_bounds = array<i64: 1, 32>}, {transform_indices = @transform_5, window_bounds = array<i64: 64, 32>}]} {
    %c0_i32 = arith.constant 0 : i32
    %0 = arith.cmpi eq, %arg1, %c0_i32 : i32
    %1 = arith.extui %0 : i1 to i32
    %c0_i32_0 = arith.constant 0 : i32
    %2 = arith.cmpi ne, %1, %c0_i32_0 : i32
    scf.if %2 {
      %cst = arith.constant 0.000000e+00 : f32
      %6 = vector.broadcast %cst : f32 to vector<8x32xf32>
      %c0 = arith.constant 0 : index
      %c0_3 = arith.constant 0 : index
      %7 = vector.load %arg8[%c0, %c0_3] : memref<8x32xf32, #tpu.memory_space<vmem>>, vector<8x32xf32>
      tpu.vector_store %arg8[%c0, %c0_3], %6 {strides = array<i32>} : memref<8x32xf32, #tpu.memory_space<vmem>>, vector<8x32xf32>,
      %cst_4 = arith.constant 0.000000e+00 : f32
      %8 = vector.broadcast %cst_4 : f32 to vector<8x32xf32>
      %c0_5 = arith.constant 0 : index
      %c0_6 = arith.constant 0 : index
      %9 = vector.load %arg9[%c0_5, %c0_6] : memref<80x32xf32, #tpu.memory_space<vmem>>, vector<8x32xf32>
      tpu.vector_store %arg9[%c0_5, %c0_6], %8 {strides = array<i32>} : memref<80x32xf32, #tpu.memory_space<vmem>>, vector<8x32xf32>,
      %c0_7 = arith.constant 0 : index
      %c0_8 = arith.constant 0 : index
      %10 = vector.load %arg2[%c0_7, %c0_8] : memref<64x32xf32, #tpu.memory_space<vmem>>, vector<64x32xf32>
      %c8 = arith.constant 8 : index
      %c0_9 = arith.constant 0 : index
      %11 = vector.load %arg9[%c8, %c0_9] : memref<80x32xf32, #tpu.memory_space<vmem>>, vector<64x32xf32>
      tpu.vector_store %arg9[%c8, %c0_9], %10 {strides = array<i32>} : memref<80x32xf32, #tpu.memory_space<vmem>>, vector<64x32xf32>,
    } else {
    }
    %c0_i32_1 = arith.constant 0 : i32
    %3 = arith.cmpi sgt, %arg1, %c0_i32_1 : i32
    %4 = arith.extui %3 : i1 to i32
    %c0_i32_2 = arith.constant 0 : i32
    %5 = arith.cmpi ne, %4, %c0_i32_2 : i32
    scf.if %5 {
      %c0 = arith.constant 0 : index
      %c0_3 = arith.constant 0 : index
      %6 = vector.load %arg2[%c0, %c0_3] : memref<64x32xf32, #tpu.memory_space<vmem>>, vector<8x32xf32>
      %c72 = arith.constant 72 : index
      %c0_4 = arith.constant 0 : index
      %7 = vector.load %arg9[%c72, %c0_4] : memref<80x32xf32, #tpu.memory_space<vmem>>, vector<8x32xf32>
      tpu.vector_store %arg9[%c72, %c0_4], %6 {strides = array<i32>} : memref<80x32xf32, #tpu.memory_space<vmem>>, vector<8x32xf32>,
      %c0_5 = arith.constant 0 : index
      %c0_6 = arith.constant 0 : index
      %8 = vector.load %arg3[%c0_5, %c0_6] : memref<96x64xf32, #tpu.memory_space<vmem>>, vector<96x64xf32>
      %c0_7 = arith.constant 0 : index
      %c0_8 = arith.constant 0 : index
      %9 = vector.load %arg4[%c0_7, %c0_8] : memref<32x32xf32, #tpu.memory_space<vmem>>, vector<32x32xf32>
      %c0_9 = arith.constant 0 : index
      %c0_10 = arith.constant 0 : index
      %10 = vector.load %arg5[%c0_9, %c0_10] : memref<1x32xf32, #tpu.memory_space<vmem>>, vector<1x32xf32>
      %c0_11 = arith.constant 0 : index
      %c0_12 = arith.constant 0 : index
      %11 = vector.load %arg6[%c0_11, %c0_12] : memref<1x32xf32, #tpu.memory_space<vmem>>, vector<1x32xf32>
      %c0_13 = arith.constant 0 : index
      %c0_14 = arith.constant 0 : index
      %12 = vector.load %arg9[%c0_13, %c0_14] : memref<80x32xf32, #tpu.memory_space<vmem>>, vector<80x32xf32>
      %cst = arith.constant dense<0.000000e+00> : vector<80x32xf32>
      %13 = tpu.matmul %12, %9, %cst {dimension_numbers = #tpu.dot_dimension_numbers<[1], [0], [0], [1], [0, 0, 1, 1], [], []>} : vector<80x32xf32>, vector<32x32xf32>, vector<80x32xf32> -> vector<80x32xf32>
      %c0_15 = arith.constant 0 : index
      %c0_16 = arith.constant 0 : index
      %14 = vector.load %arg10[%c0_15, %c0_16] : memref<80x32xf32, #tpu.memory_space<vmem>>, vector<80x32xf32>
      tpu.vector_store %arg10[%c0_15, %c0_16], %13 {strides = array<i32>} : memref<80x32xf32, #tpu.memory_space<vmem>>, vector<80x32xf32>,
      %c0_17 = arith.constant 0 : index
      %c0_18 = arith.constant 0 : index
      %15 = vector.load %arg9[%c0_17, %c0_18] : memref<80x32xf32, #tpu.memory_space<vmem>>, vector<64x32xf32>
      %16 = vector.extract_strided_slice %8 {offsets = [0, 0], sizes = [32, 64], strides = [1, 1]} : vector<96x64xf32> to vector<32x64xf32>
      %cst_19 = arith.constant dense<0.000000e+00> : vector<64x64xf32>
      %17 = tpu.matmul %15, %16, %cst_19 {dimension_numbers = #tpu.dot_dimension_numbers<[1], [0], [0], [1], [0, 0, 1, 1], [], []>} : vector<64x32xf32>, vector<32x64xf32>, vector<64x64xf32> -> vector<64x64xf32>
      %c8 = arith.constant 8 : index
      %c0_20 = arith.constant 0 : index
      %18 = vector.load %arg9[%c8, %c0_20] : memref<80x32xf32, #tpu.memory_space<vmem>>, vector<64x32xf32>
      %19 = vector.extract_strided_slice %8 {offsets = [32, 0], sizes = [32, 64], strides = [1, 1]} : vector<96x64xf32> to vector<32x64xf32>
      %cst_21 = arith.constant dense<0.000000e+00> : vector<64x64xf32>
      %20 = tpu.matmul %18, %19, %cst_21 {dimension_numbers = #tpu.dot_dimension_numbers<[1], [0], [0], [1], [0, 0, 1, 1], [], []>} : vector<64x32xf32>, vector<32x64xf32>, vector<64x64xf32> -> vector<64x64xf32>
      %21 = arith.addf %17, %20 : vector<64x64xf32>
      %c16 = arith.constant 16 : index
      %c0_22 = arith.constant 0 : index
      %22 = vector.load %arg9[%c16, %c0_22] : memref<80x32xf32, #tpu.memory_space<vmem>>, vector<64x32xf32>
      %23 = vector.extract_strided_slice %8 {offsets = [64, 0], sizes = [32, 64], strides = [1, 1]} : vector<96x64xf32> to vector<32x64xf32>
      %cst_23 = arith.constant dense<0.000000e+00> : vector<64x64xf32>
      %24 = tpu.matmul %22, %23, %cst_23 {dimension_numbers = #tpu.dot_dimension_numbers<[1], [0], [0], [1], [0, 0, 1, 1], [], []>} : vector<64x32xf32>, vector<32x64xf32>, vector<64x64xf32> -> vector<64x64xf32>
      %25 = arith.addf %21, %24 : vector<64x64xf32>
      %26 = vector.extract_strided_slice %25 {offsets = [0, 0], sizes = [64, 32], strides = [1, 1]} : vector<64x64xf32> to vector<64x32xf32>
      %27 = vector.broadcast %10 : vector<1x32xf32> to vector<64x32xf32>
      %28 = arith.addf %26, %27 : vector<64x32xf32>
      %c0_24 = arith.constant 0 : index
      %c0_25 = arith.constant 0 : index
      %29 = vector.load %arg11[%c0_24, %c0_25] : memref<64x32xf32, #tpu.memory_space<vmem>>, vector<64x32xf32>
      tpu.vector_store %arg11[%c0_24, %c0_25], %28 {strides = array<i32>} : memref<64x32xf32, #tpu.memory_space<vmem>>, vector<64x32xf32>,
      %30 = vector.extract_strided_slice %25 {offsets = [0, 32], sizes = [64, 32], strides = [1, 1]} : vector<64x64xf32> to vector<64x32xf32>
      %31 = vector.broadcast %11 : vector<1x32xf32> to vector<64x32xf32>
      %32 = arith.addf %30, %31 : vector<64x32xf32>
      %c0_26 = arith.constant 0 : index
      %c0_27 = arith.constant 0 : index
      %33 = vector.load %arg12[%c0_26, %c0_27] : memref<64x32xf32, #tpu.memory_space<vmem>>, vector<64x32xf32>
      tpu.vector_store %arg12[%c0_26, %c0_27], %32 {strides = array<i32>} : memref<64x32xf32, #tpu.memory_space<vmem>>, vector<64x32xf32>,
      %c1_i32 = arith.constant 1 : i32
      %34 = arith.cmpi eq, %arg1, %c1_i32 : i32
      %35 = arith.extui %34 : i1 to i32
      %c0_i32_28 = arith.constant 0 : i32
      %36 = arith.cmpi ne, %35, %c0_i32_28 : i32
      scf.if %36 {
        %c8_38 = arith.constant 8 : index
        %c0_39 = arith.constant 0 : index
        %44 = vector.load %arg9[%c8_38, %c0_39] : memref<80x32xf32, #tpu.memory_space<vmem>>, vector<8x32xf32>
        %45 = vector.extract_strided_slice %8 {offsets = [0, 0], sizes = [32, 64], strides = [1, 1]} : vector<96x64xf32> to vector<32x64xf32>
        %cst_40 = arith.constant dense<0.000000e+00> : vector<8x64xf32>
        %46 = tpu.matmul %44, %45, %cst_40 {dimension_numbers = #tpu.dot_dimension_numbers<[1], [0], [0], [1], [0, 0, 1, 1], [], []>} : vector<8x32xf32>, vector<32x64xf32>, vector<8x64xf32> -> vector<8x64xf32>
        %c16_41 = arith.constant 16 : index
        %c0_42 = arith.constant 0 : index
        %47 = vector.load %arg9[%c16_41, %c0_42] : memref<80x32xf32, #tpu.memory_space<vmem>>, vector<8x32xf32>
        %48 = vector.extract_strided_slice %8 {offsets = [32, 0], sizes = [32, 64], strides = [1, 1]} : vector<96x64xf32> to vector<32x64xf32>
        %cst_43 = arith.constant dense<0.000000e+00> : vector<8x64xf32>
        %49 = tpu.matmul %47, %48, %cst_43 {dimension_numbers = #tpu.dot_dimension_numbers<[1], [0], [0], [1], [0, 0, 1, 1], [], []>} : vector<8x32xf32>, vector<32x64xf32>, vector<8x64xf32> -> vector<8x64xf32>
        %50 = arith.addf %46, %49 : vector<8x64xf32>
        %51 = vector.extract_strided_slice %50 {offsets = [0, 0], sizes = [8, 32], strides = [1, 1]} : vector<8x64xf32> to vector<8x32xf32>
        %52 = vector.broadcast %10 : vector<1x32xf32> to vector<8x32xf32>
        %53 = arith.addf %51, %52 : vector<8x32xf32>
        %c0_44 = arith.constant 0 : index
        %c0_45 = arith.constant 0 : index
        %54 = vector.load %arg11[%c0_44, %c0_45] : memref<64x32xf32, #tpu.memory_space<vmem>>, vector<8x32xf32>
        tpu.vector_store %arg11[%c0_44, %c0_45], %53 {strides = array<i32>} : memref<64x32xf32, #tpu.memory_space<vmem>>, vector<8x32xf32>,
        %55 = vector.extract_strided_slice %50 {offsets = [0, 32], sizes = [8, 32], strides = [1, 1]} : vector<8x64xf32> to vector<8x32xf32>
        %56 = vector.broadcast %11 : vector<1x32xf32> to vector<8x32xf32>
        %57 = arith.addf %55, %56 : vector<8x32xf32>
        %c0_46 = arith.constant 0 : index
        %c0_47 = arith.constant 0 : index
        %58 = vector.load %arg12[%c0_46, %c0_47] : memref<64x32xf32, #tpu.memory_space<vmem>>, vector<8x32xf32>
        tpu.vector_store %arg12[%c0_46, %c0_47], %57 {strides = array<i32>} : memref<64x32xf32, #tpu.memory_space<vmem>>, vector<8x32xf32>,
      } else {
      }
      %c0_29 = arith.constant 0 : index
      %c0_30 = arith.constant 0 : index
      %37 = vector.load %arg8[%c0_29, %c0_30] : memref<8x32xf32, #tpu.memory_space<vmem>>, vector<8x32xf32>
      %c0_i32_31 = arith.constant 0 : i32
      %c8_i32 = arith.constant 8 : i32
      %38 = arith.addi %c0_i32_31, %c8_i32 : i32
      %c1_i32_32 = arith.constant 1 : i32
      %39 = scf.for %arg13 = %c0_i32_31 to %38 step %c1_i32_32 iter_args(%arg14 = %37) -> (vector<8x32xf32>)  : i32 {
        %c8_i32_38 = arith.constant 8 : i32
        %44 = arith.muli %arg13, %c8_i32_38 : i32
        %45 = tpu.assume_multiple %44, 8 : i32
        %c0_i32_39 = arith.constant 0 : i32
        %46 = arith.addi %45, %c0_i32_39 : i32
        %47 = arith.index_cast %46 : i32 to index
        %c0_40 = arith.constant 0 : index
        %48 = vector.load %arg9[%47, %c0_40] : memref<80x32xf32, #tpu.memory_space<vmem>>, vector<8x32xf32>
        %49 = arith.index_cast %46 : i32 to index
        %c0_41 = arith.constant 0 : index
        %50 = vector.load %arg10[%49, %c0_41] : memref<80x32xf32, #tpu.memory_space<vmem>>, vector<8x32xf32>
        %c8_i32_42 = arith.constant 8 : i32
        %51 = arith.addi %45, %c8_i32_42 : i32
        %52 = arith.index_cast %51 : i32 to index
        %c0_43 = arith.constant 0 : index
        %53 = vector.load %arg9[%52, %c0_43] : memref<80x32xf32, #tpu.memory_space<vmem>>, vector<8x32xf32>
        %54 = arith.index_cast %51 : i32 to index
        %c0_44 = arith.constant 0 : index
        %55 = vector.load %arg10[%54, %c0_44] : memref<80x32xf32, #tpu.memory_space<vmem>>, vector<8x32xf32>
        %c16_i32 = arith.constant 16 : i32
        %56 = arith.addi %45, %c16_i32 : i32
        %57 = arith.index_cast %56 : i32 to index
        %c0_45 = arith.constant 0 : index
        %58 = vector.load %arg9[%57, %c0_45] : memref<80x32xf32, #tpu.memory_space<vmem>>, vector<8x32xf32>
        %59 = arith.index_cast %56 : i32 to index
        %c0_46 = arith.constant 0 : index
        %60 = vector.load %arg10[%59, %c0_46] : memref<80x32xf32, #tpu.memory_space<vmem>>, vector<8x32xf32>
        %61 = arith.mulf %arg14, %48 : vector<8x32xf32>
        %cst_47 = arith.constant dense<0.000000e+00> : vector<8xf32>
        %62 = vector.multi_reduction <add>, %61, %cst_47 [1] : vector<8x32xf32> to vector<8xf32>
        %63 = vector.shape_cast %62 : vector<8xf32> to vector<8x1xf32>
        %cst_48 = arith.constant 0.176776692 : f32
        %64 = vector.broadcast %cst_48 : f32 to vector<8x1xf32>
        %65 = arith.mulf %63, %64 : vector<8x1xf32>
        %66 = arith.mulf %arg14, %53 : vector<8x32xf32>
        %cst_49 = arith.constant dense<0.000000e+00> : vector<8xf32>
        %67 = vector.multi_reduction <add>, %66, %cst_49 [1] : vector<8x32xf32> to vector<8xf32>
        %68 = vector.shape_cast %67 : vector<8xf32> to vector<8x1xf32>
        %cst_50 = arith.constant 0.176776692 : f32
        %69 = vector.broadcast %cst_50 : f32 to vector<8x1xf32>
        %70 = arith.mulf %68, %69 : vector<8x1xf32>
        %71 = arith.mulf %arg14, %58 : vector<8x32xf32>
        %cst_51 = arith.constant dense<0.000000e+00> : vector<8xf32>
        %72 = vector.multi_reduction <add>, %71, %cst_51 [1] : vector<8x32xf32> to vector<8xf32>
        %73 = vector.shape_cast %72 : vector<8xf32> to vector<8x1xf32>
        %cst_52 = arith.constant 0.176776692 : f32
        %74 = vector.broadcast %cst_52 : f32 to vector<8x1xf32>
        %75 = arith.mulf %73, %74 : vector<8x1xf32>
        %76 = arith.maximumf %65, %70 : vector<8x1xf32>
        %77 = arith.maximumf %76, %75 : vector<8x1xf32>
        %78 = arith.subf %65, %77 : vector<8x1xf32>
        %79 = math.exp %78 : vector<8x1xf32>
        %80 = arith.subf %70, %77 : vector<8x1xf32>
        %81 = math.exp %80 : vector<8x1xf32>
        %82 = arith.subf %75, %77 : vector<8x1xf32>
        %83 = math.exp %82 : vector<8x1xf32>
        %84 = arith.addf %79, %81 : vector<8x1xf32>
        %85 = arith.addf %84, %83 : vector<8x1xf32>
        %86 = tpu.reciprocal %85 {approx = true} : vector<8x1xf32> -> vector<8x1xf32>
        %87 = vector.broadcast %79 : vector<8x1xf32> to vector<8x32xf32>
        %88 = arith.mulf %87, %48 : vector<8x32xf32>
        %89 = vector.broadcast %79 : vector<8x1xf32> to vector<8x32xf32>
        %90 = arith.mulf %89, %50 : vector<8x32xf32>
        %91 = vector.broadcast %81 : vector<8x1xf32> to vector<8x32xf32>
        %92 = arith.mulf %91, %53 : vector<8x32xf32>
        %93 = arith.addf %88, %92 : vector<8x32xf32>
        %94 = vector.broadcast %81 : vector<8x1xf32> to vector<8x32xf32>
        %95 = arith.mulf %94, %55 : vector<8x32xf32>
        %96 = arith.addf %90, %95 : vector<8x32xf32>
        %97 = vector.broadcast %83 : vector<8x1xf32> to vector<8x32xf32>
        %98 = arith.mulf %97, %58 : vector<8x32xf32>
        %99 = arith.addf %93, %98 : vector<8x32xf32>
        %100 = vector.broadcast %83 : vector<8x1xf32> to vector<8x32xf32>
        %101 = arith.mulf %100, %60 : vector<8x32xf32>
        %102 = arith.addf %96, %101 : vector<8x32xf32>
        %103 = vector.broadcast %86 : vector<8x1xf32> to vector<8x32xf32>
        %104 = arith.mulf %99, %103 : vector<8x32xf32>
        %105 = arith.index_cast %45 : i32 to index
        %c0_53 = arith.constant 0 : index
        %106 = vector.load %arg12[%105, %c0_53] : memref<64x32xf32, #tpu.memory_space<vmem>>, vector<8x32xf32>
        %107 = vector.broadcast %86 : vector<8x1xf32> to vector<8x32xf32>
        %108 = arith.mulf %102, %107 : vector<8x32xf32>
        %109 = arith.addf %106, %108 : vector<8x32xf32>
        %110 = arith.negf %109 : vector<8x32xf32>
        %111 = math.exp %110 : vector<8x32xf32>
        %cst_54 = arith.constant 1.000000e+00 : f32
        %112 = vector.broadcast %cst_54 : f32 to vector<8x32xf32>
        %113 = arith.addf %112, %111 : vector<8x32xf32>
        %114 = arith.divf %112, %113 : vector<8x32xf32>
        %115 = arith.index_cast %45 : i32 to index
        %c0_55 = arith.constant 0 : index
        %116 = vector.load %arg11[%115, %c0_55] : memref<64x32xf32, #tpu.memory_space<vmem>>, vector<8x32xf32>
        %117 = arith.mulf %104, %114 : vector<8x32xf32>
        %118 = arith.addf %116, %117 : vector<8x32xf32>
        %119 = arith.index_cast %45 : i32 to index
        %c0_56 = arith.constant 0 : index
        %120 = vector.load %arg7[%119, %c0_56] : memref<64x32xf32, #tpu.memory_space<vmem>>, vector<8x32xf32>
        tpu.vector_store %arg7[%119, %c0_56], %118 {strides = array<i32>} : memref<64x32xf32, #tpu.memory_space<vmem>>, vector<8x32xf32>,
        scf.yield %118 : vector<8x32xf32>
      }
      %c8_i32_33 = arith.constant 8 : i32
      %c0_34 = arith.constant 0 : index
      %c0_35 = arith.constant 0 : index
      %40 = vector.load %arg8[%c0_34, %c0_35] : memref<8x32xf32, #tpu.memory_space<vmem>>, vector<8x32xf32>
      tpu.vector_store %arg8[%c0_34, %c0_35], %39 {strides = array<i32>} : memref<8x32xf32, #tpu.memory_space<vmem>>, vector<8x32xf32>,
      %c1_i32_36 = arith.constant 1 : i32
      %41 = arith.cmpi slt, %arg1, %c1_i32_36 : i32
      %42 = arith.extui %41 : i1 to i32
      %c0_i32_37 = arith.constant 0 : i32
      %43 = arith.cmpi ne, %42, %c0_i32_37 : i32
      scf.if %43 {
        %c64 = arith.constant 64 : index
        %c0_38 = arith.constant 0 : index
        %44 = vector.load %arg9[%c64, %c0_38] : memref<80x32xf32, #tpu.memory_space<vmem>>, vector<8x32xf32>
        %c0_39 = arith.constant 0 : index
        %c0_40 = arith.constant 0 : index
        %45 = vector.load %arg9[%c0_39, %c0_40] : memref<80x32xf32, #tpu.memory_space<vmem>>, vector<8x32xf32>
        tpu.vector_store %arg9[%c0_39, %c0_40], %44 {strides = array<i32>} : memref<80x32xf32, #tpu.memory_space<vmem>>, vector<8x32xf32>,
        %c0_41 = arith.constant 0 : index
        %c0_42 = arith.constant 0 : index
        %46 = vector.load %arg2[%c0_41, %c0_42] : memref<64x32xf32, #tpu.memory_space<vmem>>, vector<64x32xf32>
        %c8_43 = arith.constant 8 : index
        %c0_44 = arith.constant 0 : index
        %47 = vector.load %arg9[%c8_43, %c0_44] : memref<80x32xf32, #tpu.memory_space<vmem>>, vector<64x32xf32>
        tpu.vector_store %arg9[%c8_43, %c0_44], %46 {strides = array<i32>} : memref<80x32xf32, #tpu.memory_space<vmem>>, vector<64x32xf32>,
      } else {
      }
    } else {
    }
    return
  }
  func.func @transform_0(%arg0: i32, %arg1: i32) -> (i32, i32) {
    %c2_i32 = arith.constant 2 : i32
    %0 = arith.muli %arg0, %c2_i32 : i32
    %1 = arith.addi %0, %arg1 : i32
    %c0_i32 = arith.constant 0 : i32
    %c0_i32_0 = arith.constant 0 : i32
    return %1, %c0_i32 : i32, i32
  }
  func.func @transform_1(%arg0: i32, %arg1: i32) -> (i32, i32) {
    %c0_i32 = arith.constant 0 : i32
    %c0_i32_0 = arith.constant 0 : i32
    %c0_i32_1 = arith.constant 0 : i32
    return %c0_i32, %c0_i32_0 : i32, i32
  }
  func.func @transform_2(%arg0: i32, %arg1: i32) -> (i32, i32) {
    %c0_i32 = arith.constant 0 : i32
    %c0_i32_0 = arith.constant 0 : i32
    %c0_i32_1 = arith.constant 0 : i32
    return %c0_i32, %c0_i32_0 : i32, i32
  }
  func.func @transform_3(%arg0: i32, %arg1: i32) -> (i32, i32) {
    %c0_i32 = arith.constant 0 : i32
    %c0_i32_0 = arith.constant 0 : i32
    %c0_i32_1 = arith.constant 0 : i32
    return %c0_i32, %c0_i32_0 : i32, i32
  }
  func.func @transform_4(%arg0: i32, %arg1: i32) -> (i32, i32) {
    %c0_i32 = arith.constant 0 : i32
    %c0_i32_0 = arith.constant 0 : i32
    %c0_i32_1 = arith.constant 0 : i32
    return %c0_i32, %c0_i32_0 : i32, i32
  }
  func.func @transform_5(%arg0: i32, %arg1: i32) -> (i32, i32) {
    %c1_i32 = arith.constant 1 : i32
    %0 = arith.muli %arg0, %c1_i32 : i32
    %c1_i32_0 = arith.constant 1 : i32
    %1 = arith.subi %arg1, %c1_i32_0 : i32
    %c0_i32 = arith.constant 0 : i32
    %2 = arith.maxsi %1, %c0_i32 : i32
    %3 = arith.addi %0, %2 : i32
    %c0_i32_1 = arith.constant 0 : i32
    %c0_i32_2 = arith.constant 0 : i32
    return %3, %c0_i32_1 : i32, i32
  }
}

</mosaic_0001>

<bundles_post_ra>
// kernel: tpu_custom_call.1
= control target key start
LH: loop header
LB: loop body
LE: loop exit
PB: predicated region body
PF: predicated region fallthrough
CT: control target
= control target key end

     0   :  { %s1753_s18 = smov 0   ;;  %s1755_s19 = smov 0   ;;  %s2030_s0 = inlined_call_operand.vmem [shape: f32[128,32], index: 0, kind: input, shape index: {}]   ;;  %s2031_s1 = inlined_call_operand.vmem [shape: f32[96,64], index: 1, kind: input, shape index: {}]   ;;  %s2032_s2 = inlined_call_operand.vmem [shape: f32[32,32], index: 2, kind: input, shape index: {}]   ;;  %s2033_s3 = inlined_call_operand.vmem [shape: f32[1,32], index: 3, kind: input, shape index: {}]   ;;  %s2034_s4 = inlined_call_operand.vmem [shape: f32[1,32], index: 4, kind: input, shape index: {}]   ;;  %s2035_s5 = inlined_call_operand.vmem [shape: f32[64,32], index: 5, kind: output, shape index: {}]  }
   0x1   :  { %s1757_s20 = smov 0  }
   0x2 LB: > { %s24_s21 = sadd.s32 1, %s1702_s19  ;;  %p1331_p0 = scmp.ge.s32.totalorder %s1706_s20, 1  ;;  %s1706_s20 = sphi %s1757_s20, %s15_s20   ;;  %s1702_s19 = sphi %s1755_s19, %s2038_s19   ;;  %s1698_s18 = sphi %s1753_s18, %s2037_s18  }
   0x3   : > { %p25_p1 = scmp.ge.s32.totalorder %s24_s21, 2  ;;  %p216_p2 = scmp.lt.s32.totalorder %s1706_s20, 3 }
   0x5   : > { %s2040_s21 = smov (%p25_p1, %s24_s21), 0  ;;  %p217_p3 = pnand %p1331_p0, %p216_p2 }
   0x6   : > { %s1332_s22 = sshll.u32 (!%p217_p3), %s1698_s18, 3  ;;  %s1334_s23 = sadd.s32 (!%p217_p3), 4294967295, %s1698_s18 }
   0x7   : > { %220 = sbr.rel (%p217_p3) target bundleno = 829 (0x33d), region = 40  ;;  %p253_p4 = scmp.lt.s32.totalorder (!%p217_p3), %s1332_s22, 15 }
   0x8   : > { %p261_p5 = scmp.gt.s32.totalorder (!%p217_p3), %s1334_s23, 0  ;;  %p1337_p7 = scmp.ne.s32.totalorder (!%p217_p3), %s1698_s18, 0 }
   0xe   : > { %s2042_s22 = smov (!%p253_p4, %s1332_s22), 15  ;;  %s2044_s23 = smov (!%p261_p5, %s1334_s23), 0 }
   0xf   : > { %s1333_s24 = sshll.u32 %s2042_s22, 3  ;;  %s1335_s28 = sshll.u32 %s2044_s23, 3  ;;  %vm278_vm0 = vcmask (!%p1337_p7), 261120   ;;  %v1716_v3 = vmov (!%p1337_p7), 0.0  }
  0x10   : > { %s1778_s27 = scalar_lea.vmem %s2030_s0, %s1333_s24  ;;  %p265_p6 = scmp.lt.s32.totalorder %s1335_s28, 7  ;;  %279 = vst.msk [vmem:[#allocation2] sm:$0xff] (!%p1337_p7), %vm278_vm0, %v1716_v3  ;;  %280 = vst.msk [vmem:[#allocation3] sm:$0xff] (!%p1337_p7), %vm278_vm0, %v1716_v3 }
  0x11   : > { %277 = sbr.rel (%p1337_p7) target bundleno = 24 (0x18), region = 44  ;;  %v281_v0 = vld [vmem:[%s1778_s27] sm:$0xff] (!%p1337_p7)  ;;  %v282_v1 = vld [vmem:[%s1778_s27 + $0x8] sm:$0xff] (!%p1337_p7)  ;;  %v283_v2 = vld [vmem:[%s1778_s27 + $0x10] sm:$0xff] (!%p1337_p7) }
  0x12   : > { %s2046_s28 = smov (!%p265_p6, %s1335_s28), 7  ;;  %289 = vst.msk [vmem:[#allocation3 + $0x8] sm:$0xff] (!%p1337_p7), %vm278_vm0, %v281_v0  ;;  %290 = vst.msk [vmem:[#allocation3 + $0x10] sm:$0xff] (!%p1337_p7), %vm278_vm0, %v282_v1  ;;  %v284_v4 = vld [vmem:[%s1778_s27 + $0x18] sm:$0xff] (!%p1337_p7)  ;;  %v285_v5 = vld [vmem:[%s1778_s27 + $0x20] sm:$0xff] (!%p1337_p7) }
  0x13   : > { %s1336_s29 = sshll.u32 %s2046_s28, 3  ;;  %291 = vst.msk [vmem:[#allocation3 + $0x18] sm:$0xff] (!%p1337_p7), %vm278_vm0, %v283_v2  ;;  %v286_v6 = vld [vmem:[%s1778_s27 + $0x28] sm:$0xff] (!%p1337_p7)  ;;  %292 = vst.msk [vmem:[#allocation3 + $0x20] sm:$0xff] (!%p1337_p7), %vm278_vm0, %v284_v4  ;;  %v287_v7 = vld [vmem:[%s1778_s27 + $0x30] sm:$0xff] (!%p1337_p7) }
  0x14   : > { %s1783_s7 = scalar_lea.vmem %s2035_s5, %s1336_s29  ;;  %293 = vst.msk [vmem:[#allocation3 + $0x28] sm:$0xff] (!%p1337_p7), %vm278_vm0, %v285_v5  ;;  %294 = vst.msk [vmem:[#allocation3 + $0x30] sm:$0xff] (!%p1337_p7), %vm278_vm0, %v286_v6  ;;  %v288_v8 = vld [vmem:[%s1778_s27 + $0x38] sm:$0xff] (!%p1337_p7) }
  0x15   : > { %295 = vst.msk [vmem:[#allocation3 + $0x38] sm:$0xff] (!%p1337_p7), %vm278_vm0, %v287_v7  ;;  %296 = vst.msk [vmem:[#allocation3 + $0x40] sm:$0xff] (!%p1337_p7), %vm278_vm0, %v288_v8 }
  0x18 PF: > { %p1338_p8 = scmp.le.s32.totalorder %s1698_s18, 0 }
  0x19   : > { %v316_v9 = vld [vmem:[%s2032_s2] sm:$0xff] (!%p1338_p8)  ;;  %v317_v10 = vld [vmem:[%s2032_s2 + $0x8] sm:$0xff] (!%p1338_p8)  ;;  %vm302_vm1 = vcmask (!%p1338_p8), 261120   ;;  %v318_v14 = vld [vmem:[%s2032_s2 + $0x10] sm:$0xff] (!%p1338_p8)  ;;  %s1717_s28 = smov (!%p1338_p8), 32   ;;  %s1718_s6 = smov (!%p1338_p8), 96  }
  0x1a   : > { %300 = sbr.rel (%p1338_p8) target bundleno = 829 (0x33d), region = 48  ;;  %v304_v11 = vld [vmem:[%s2031_s1] sm:$0xff] (!%p1338_p8)  ;;  %v1556_v12 = vpack.c.bf16 (!%p1338_p8), %v317_v10, %v316_v9  ;;  %v305_v13 = vld [vmem:[%s2031_s1 + $0x8] sm:$0xff] (!%p1338_p8)  ;;  %v319_v15 = vld [vmem:[%s2032_s2 + $0x18] sm:$0xff] (!%p1338_p8)  ;;  %p1375_p9 = scmp.ne.s32.totalorder (!%p1338_p8), %s1698_s18, 1 }
  0x1b   : > { %v1823_v16 = vpack.c.bf16 (!%p1338_p8), %v305_v13, %v304_v11  ;;  %v1560_v17 = vpack.c.bf16 (!%p1338_p8), %v319_v15, %v318_v14  ;;  %v306_v18 = vld [vmem:[%s2031_s1 + $0x10] sm:$0xff] (!%p1338_p8)  ;;  %v307_v19 = vld [vmem:[%s2031_s1 + $0x18] sm:$0xff] (!%p1338_p8)  ;;  %v322_v20 = vld [vmem:[#allocation3] sm:$0xff] (!%p1338_p8) }
  0x1c   : > { %1557 = vmatprep.subr.bf16.mxu0 (!%p1338_p8), %v1556_v12  ;;  %v1831_v21 = vpack.c.bf16 (!%p1338_p8), %v307_v19, %v306_v18  ;;  %1459 = vmatprep.mubr.msk.f32.mxu0 (!%p1338_p8), %vm302_vm1, %v322_v20  ;;  %v308_v22 = vld [vmem:[%s2031_s1 + $0x20] sm:$0xff] (!%p1338_p8)  ;;  %v309_v23 = vld [vmem:[%s2031_s1 + $0x28] sm:$0xff] (!%p1338_p8)  ;;  %v323_v27 = vld [vmem:[#allocation3 + $0x8] sm:$0xff] (!%p1338_p8) }
  0x1d   : > { %1573 = vmatprep.subr.bf16.mxu1 (!%p1338_p8), %v1823_v16  ;;  %1559 = vmatpush3.bf16.msra.mxu0 (!%p1338_p8), %v1556_v12  ;;  %v312_v24 = vld [vmem:[%s2031_s1 + $0x40] sm:$0xff] (!%p1338_p8)  ;;  %v1845_v25 = vpack.c.bf16 (!%p1338_p8), %v309_v23, %v308_v22  ;;  %v313_v26 = vld [vmem:[%s2031_s1 + $0x48] sm:$0xff] (!%p1338_p8)  ;;  %v310_v29 = vld [vmem:[%s2031_s1 + $0x30] sm:$0xff] (!%p1338_p8) }
  0x1e   : > { %1575 = vmatpush3.bf16.msra.mxu1 (!%p1338_p8), %v1823_v16  ;;  %1561 = vmatprep.subr.bf16.mxu0 (!%p1338_p8), %v1560_v17  ;;  %v1580_v28 = vpack.c.bf16 (!%p1338_p8), %v313_v26, %v312_v24  ;;  %v311_v30 = vld [vmem:[%s2031_s1 + $0x38] sm:$0xff] (!%p1338_p8)  ;;  %v314_v31 = vld [vmem:[%s2031_s1 + $0x50] sm:$0xff] (!%p1338_p8)  ;;  %v301_v33 = vld [vmem:[%s1778_s27] sm:$0xff] (!%p1338_p8) }
  0x1f   : > { %1577 = vmatprep.subr.bf16.mxu1 (!%p1338_p8), %v1831_v21  ;;  %1502 = vmatprep.mubr.msk.f32.mxu1 (!%p1338_p8), %vm302_vm1, %v322_v20  ;;  %v315_v32 = vld [vmem:[%s2031_s1 + $0x58] sm:$0xff] (!%p1338_p8)  ;;  %v1374_v34 = vld [vmem:[%s2034_s4] ss:$0 sm:$0xff] (!%p1338_p8)  ;;  %303 = vst.msk [vmem:[#allocation3 + $0x48] sm:$0xff] (!%p1338_p8), %vm302_vm1, %v301_v33  ;;  %v1871_v36 = vpack.c.bf16 (!%p1338_p8), %v311_v30, %v310_v29  ;;  %v326_v39 = vld [vmem:[#allocation3 + $0x20] sm:$0xff] (!%p1338_p8) }
  0x20   : > { %v324_v35 = vld [vmem:[#allocation3 + $0x10] sm:$0xff] (!%p1338_p8)  ;;  %905 = vrot.lane.b32.xlu0 (!%p1338_p8), %v1374_v34, %s1717_s28  ;;  %v1584_v37 = vpack.c.bf16 (!%p1338_p8), %v315_v32, %v314_v31  ;;  %v325_v38 = vld [vmem:[#allocation3 + $0x18] sm:$0xff] (!%p1338_p8)  ;;  %v327_v40 = vld [vmem:[#allocation3 + $0x28] sm:$0xff] (!%p1338_p8) }
  0x21   : > { %1563 = vmatpush3.bf16.msra.mxu0 %v1560_v17  ;;  %v328_v41 = vld [vmem:[#allocation3 + $0x30] sm:$0xff]  ;;  %v329_v42 = vld [vmem:[#allocation3 + $0x38] sm:$0xff]  ;;  %v330_v43 = vld [vmem:[#allocation3 + $0x40] sm:$0xff]  ;;  %vm1720_vm2 = vmmov (!%p1375_p9), 0   ;;  %s1722_s8 = smov (!%p1375_p9), 96  }
  0x22   : > { %1579 = vmatpush3.bf16.msra.mxu1 %v1831_v21  ;;  %1565 = vmatprep.subr.bf16.mxu0 %v1845_v25  ;;  %v1921_v57 = vld [vmem:[%s2033_s3] ss:$0 sm:$0xff] }
  0x23   : > { %1581 = vmatprep.subr.bf16.mxu1 %v1580_v28 }
  0x24   : > { %1460 = vmatmul.mubr.msk.f32.vlgmr.msra.gmra.mrb[0].mxu0 %vm302_vm1, %v323_v27 }
  0x25   : > { %1503 = vmatmul.mubr.msk.f32.vlgmr.msra.gmra.mrb[0].mxu1 %vm302_vm1, %v323_v27  ;;  %1567 = vmatpush3.bf16.msra.mxu0 %v1845_v25 }
  0x26   : > { %1462 = vmatprep.mubr.msk.f32.mxu0 %vm302_vm1, %v324_v35  ;;  %1505 = vmatprep.mubr.msk.f32.mxu1 %vm302_vm1, %v324_v35  ;;  %v331_v44 = vld [vmem:[#allocation3 + $0x48] sm:$0xff] }
  0x27   : > { %1583 = vmatpush3.bf16.msra.mxu1 %v1580_v28  ;;  %1569 = vmatprep.subr.bf16.mxu0 %v1871_v36 }
  0x28   : > { %1463 = vmatmul.mubr.msk.f32.gmra.mrb[2].mxu0 %vm302_vm1, %v325_v38  ;;  %1585 = vmatprep.subr.bf16.mxu1 %v1584_v37 }
  0x29   : > { %1506 = vmatmul.mubr.msk.f32.gmra.mrb[2].mxu1 %vm302_vm1, %v325_v38  ;;  %1465 = vmatprep.mubr.msk.f32.mxu0 %vm302_vm1, %v326_v39 }
  0x2a   : > { %1508 = vmatprep.mubr.msk.f32.mxu1 %vm302_vm1, %v326_v39  ;;  %1571 = vmatpush3.bf16.msra.mxu0 %v1871_v36 }
  0x2b   : > { %1587 = vmatpush3.bf16.msra.mxu1 %v1584_v37 }
  0x2c   : > { %1466 = vmatmul.mubr.msk.f32.gmra.mrb[4].mxu0 %vm302_vm1, %v327_v40 }
  0x2d   : > { %1509 = vmatmul.mubr.msk.f32.gmra.mrb[4].mxu1 %vm302_vm1, %v327_v40  ;;  %1468 = vmatprep.mubr.msk.f32.mxu0 %vm302_vm1, %v328_v41 }
  0x2e   : > { %1511 = vmatprep.mubr.msk.f32.mxu1 %vm302_vm1, %v328_v41 }
  0x30   : > { %1469 = vmatmul.mubr.msk.f32.gmra.mrb[6].mxu0 %vm302_vm1, %v329_v42 }
  0x31   : > { %1512 = vmatmul.mubr.msk.f32.gmra.mrb[6].mxu1 %vm302_vm1, %v329_v42  ;;  %1471 = vmatprep.mubr.msk.f32.mxu0 %vm302_vm1, %v330_v43 }
  0x32   : > { %1522 = vmatprep.mubr.msk.f32.mxu1 %vm302_vm1, %v324_v35 }
  0x34   : > { %1472 = vmatmul.mubr.msk.f32.gmra.mrb[8].mxu0 %vm302_vm1, %v331_v44 }
  0x35   : > { %1523 = vmatmul.mubr.msk.f32.vlgmr.msra.gmra.mrb[0].mxu1 %vm302_vm1, %v325_v38  ;;  %1482 = vmatprep.mubr.msk.f32.mxu0 %vm302_vm1, %v323_v27 }
  0x36   : > { %1525 = vmatprep.mubr.msk.f32.mxu1 %vm302_vm1, %v326_v39 }
  0x38   : > { %1483 = vmatmul.mubr.msk.f32.vlgmr.msra.gmra.mrb[10].mxu0 %vm302_vm1, %v324_v35 }
  0x39   : > { %1526 = vmatmul.mubr.msk.f32.gmra.mrb[2].mxu1 %vm302_vm1, %v327_v40  ;;  %1485 = vmatprep.mubr.msk.f32.mxu0 %vm302_vm1, %v325_v38 }
  0x3a   : > { %1528 = vmatprep.mubr.msk.f32.mxu1 %vm302_vm1, %v328_v41 }
  0x3c   : > { %1486 = vmatmul.mubr.msk.f32.gmra.mrb[12].mxu0 %vm302_vm1, %v326_v39 }
  0x3d   : > { %1529 = vmatmul.mubr.msk.f32.gmra.mrb[4].mxu1 %vm302_vm1, %v329_v42  ;;  %1488 = vmatprep.mubr.msk.f32.mxu0 %vm302_vm1, %v327_v40 }
  0x3e   : > { %1531 = vmatprep.mubr.msk.f32.mxu1 %vm302_vm1, %v330_v43 }
  0x40   : > { %1489 = vmatmul.mubr.msk.f32.gmra.mrb[14].mxu0 %vm302_vm1, %v328_v41 }
  0x41   : > { %1532 = vmatmul.mubr.msk.f32.gmra.mrb[6].mxu1 %vm302_vm1, %v331_v44  ;;  %1491 = vmatprep.mubr.msk.f32.mxu0 %vm302_vm1, %v329_v42 }
  0x44   : > { %1492 = vmatmul.mubr.msk.f32.gmra.mrb[16].mxu0 %vm302_vm1, %v330_v43 }
  0x92   : > { %v1923_v59 = vpop.permute.xlu0 %905 }
  0xf7   : > { %v1461_v45 = vpop.f32.mrb[0].mxu0 }
  0xf8   : > { %478 = vst.msk [vmem:[#allocation4 + $0x8] sm:$0xff] %vm302_vm1, %v1461_v45  ;;  %v428_v46 = vpop.f32.mrb[1].mxu0  ;;  %v1719_v45 = vmov (!%p1375_p9), 0.0|0.0  }
  0xf9   : > { %477 = vst.msk [vmem:[#allocation4] sm:$0xff] %vm302_vm1, %v428_v46  ;;  %1588 = vmatprep.subr.bf16.mxu1 (!%p1375_p9), %v1719_v45  ;;  %1594 = vmatprep.subr.bf16.mxu0 (!%p1375_p9), %v1719_v45  ;;  %v1721_v46 = vmov (!%p1375_p9), 0.0  }
  0xfa   : > { %1590 = vmatpush3.bf16.msra.mxu1 (!%p1375_p9), %v1845_v25  ;;  %1596 = vmatpush3.bf16.msra.mxu0 (!%p1375_p9), %v1823_v16 }
  0xfb   : > { %v1464_v47 = vpop.f32.mrb[2].mxu0  ;;  %1591 = vmatprep.subr.bf16.mxu1 (!%p1375_p9), %v1719_v45  ;;  %1597 = vmatprep.subr.bf16.mxu0 (!%p1375_p9), %v1719_v45 }
  0xfc   : > { %480 = vst.msk [vmem:[#allocation4 + $0x18] sm:$0xff] %vm302_vm1, %v1464_v47  ;;  %v438_v48 = vpop.f32.mrb[3].mxu0  ;;  %1542 = vmatprep.mubr.msk.f32.mxu1 (!%p1375_p9), %vm1720_vm2, %v1721_v46  ;;  %1553 = vmatprep.mubr.msk.f32.mxu0 (!%p1375_p9), %vm1720_vm2, %v1721_v46  ;;  %v961_v47 = vld [vmem:[#allocation3 + $0x10] sm:$0xff] (!%p1375_p9) }
  0xfd   : > { %479 = vst.msk [vmem:[#allocation4 + $0x10] sm:$0xff] %vm302_vm1, %v438_v48  ;;  %v960_v48 = vld [vmem:[#allocation3 + $0x8] sm:$0xff] (!%p1375_p9) }
  0xfe   : > { %1593 = vmatpush3.bf16.msra.mxu1 (!%p1375_p9), %v1871_v36  ;;  %1599 = vmatpush3.bf16.msra.mxu0 (!%p1375_p9), %v1831_v21 }
  0xff   : > { %v1467_v49 = vpop.f32.mrb[4].mxu0 }
 0x100   : > { %482 = vst.msk [vmem:[#allocation4 + $0x28] sm:$0xff] %vm302_vm1, %v1467_v49  ;;  %v448_v50 = vpop.f32.mrb[5].mxu0 }
 0x101   : > { %481 = vst.msk [vmem:[#allocation4 + $0x20] sm:$0xff] %vm302_vm1, %v448_v50  ;;  %1554 = vmatmul.mubr.msk.f32.vlgmr.msra.gmra.mrb[0].mxu0 (!%p1375_p9), %vm302_vm1, %v960_v48 }
 0x103   : > { %v1470_v51 = vpop.f32.mrb[6].mxu0 }
 0x104   : > { %484 = vst.msk [vmem:[#allocation4 + $0x38] sm:$0xff] %vm302_vm1, %v1470_v51  ;;  %v458_v52 = vpop.f32.mrb[7].mxu0 }
 0x105   : > { %483 = vst.msk [vmem:[#allocation4 + $0x30] sm:$0xff] %vm302_vm1, %v458_v52 }
 0x107   : > { %v1473_v53 = vpop.f32.mrb[8].mxu0 }
 0x108   : > { %486 = vst.msk [vmem:[#allocation4 + $0x48] sm:$0xff] %vm302_vm1, %v1473_v53  ;;  %v1524_v54 = vpop.f32.mrb[0].mxu1  ;;  %v468_v55 = vpop.f32.mrb[9].mxu0 }
 0x109   : > { %485 = vst.msk [vmem:[#allocation4 + $0x40] sm:$0xff] %vm302_vm1, %v468_v55  ;;  %v831_v56 = vpop.f32.mrb[1].mxu1  ;;  %1543 = vmatmul.mubr.msk.f32.vlgmr.msra.gmra.mrb[0].mxu1 (!%p1375_p9), %vm302_vm1, %v961_v47 }
 0x10b   : > { %v1484_v58 = vpop.f32.mrb[10].mxu0 }
 0x10c   : > { %v1600_v60 = vadd.f32 %v1524_v54, %v1484_v58  ;;  %v1527_v61 = vpop.f32.mrb[2].mxu1  ;;  %v586_v62 = vpop.f32.mrb[11].mxu0 }
 0x10d   : > { %v1601_v63 = vadd.f32 %v831_v56, %v586_v62  ;;  %v841_v0 = vpop.f32.mrb[3].mxu1 }
 0x10e   : > { %v885_v1 = vadd.f32 %v1600_v60, %v1921_v57  ;;  %v909_v2 = vadd.f32 %v1600_v60, %v1923_v59 }
 0x10f   : > { %v884_v3 = vadd.f32 %v1601_v63, %v1921_v57  ;;  %v1487_v4 = vpop.f32.mrb[12].mxu0  ;;  %v908_v5 = vadd.f32 %v1601_v63, %v1923_v59 }
 0x110   : > { %893 = vst.msk [vmem:[#allocation5 + $0x8] sm:$0xff] %vm302_vm1, %v885_v1  ;;  %v1602_v6 = vadd.f32 %v1527_v61, %v1487_v4  ;;  %v1530_v7 = vpop.f32.mrb[4].mxu1  ;;  %926 = vrot.lane.b32.xlu1 %v909_v2, %s1718_s6  ;;  %v596_v8 = vpop.f32.mrb[13].mxu0 }
 0x111   : > { %892 = vst.msk [vmem:[#allocation5] sm:$0xff] %vm302_vm1, %v884_v3  ;;  %v851_v9 = vpop.f32.mrb[5].mxu1  ;;  %v1603_v10 = vadd.f32 %v841_v0, %v596_v8  ;;  %924 = vrot.lane.b32.xlu0 %v908_v5, %s1718_s6 }
 0x112   : > { %v887_v11 = vadd.f32 %v1602_v6, %v1921_v57  ;;  %v911_v12 = vadd.f32 %v1602_v6, %v1923_v59 }
 0x113   : > { %v886_v13 = vadd.f32 %v1603_v10, %v1921_v57  ;;  %v910_v14 = vadd.f32 %v1603_v10, %v1923_v59  ;;  %v1490_v15 = vpop.f32.mrb[14].mxu0 }
 0x114   : > { %895 = vst.msk [vmem:[#allocation5 + $0x18] sm:$0xff] %vm302_vm1, %v887_v11  ;;  %v1604_v17 = vadd.f32 %v1530_v7, %v1490_v15  ;;  %v1533_v18 = vpop.f32.mrb[6].mxu1  ;;  %v606_v19 = vpop.f32.mrb[15].mxu0 }
 0x115   : > { %894 = vst.msk [vmem:[#allocation5 + $0x10] sm:$0xff] %vm302_vm1, %v886_v13  ;;  %v1605_v20 = vadd.f32 %v851_v9, %v606_v19  ;;  %v861_v22 = vpop.f32.mrb[7].mxu1  ;;  %930 = vrot.lane.b32.xlu0 %v911_v12, %s1718_s6  ;;  %928 = vrot.lane.b32.xlu1 %v910_v14, %s1718_s6 }
 0x116   : > { %v889_v23 = vadd.f32 %v1604_v17, %v1921_v57  ;;  %v913_v24 = vadd.f32 %v1604_v17, %v1923_v59 }
 0x117   : > { %v888_v26 = vadd.f32 %v1605_v20, %v1921_v57  ;;  %v912_v27 = vadd.f32 %v1605_v20, %v1923_v59  ;;  %v1493_v28 = vpop.f32.mrb[16].mxu0 }
 0x118   : > { %897 = vst.msk [vmem:[#allocation5 + $0x28] sm:$0xff] %vm302_vm1, %v889_v23  ;;  %v1606_v29 = vadd.f32 %v1533_v18, %v1493_v28  ;;  %v616_v30 = vpop.f32.mrb[17].mxu0 }
 0x119   : > { %896 = vst.msk [vmem:[#allocation5 + $0x20] sm:$0xff] %vm302_vm1, %v888_v26  ;;  %v1607_v31 = vadd.f32 %v861_v22, %v616_v30  ;;  %934 = vrot.lane.b32.xlu0 %v913_v24, %s1718_s6  ;;  %932 = vrot.lane.b32.xlu1 %v912_v27, %s1718_s6 }
 0x11a   : > { %v891_v32 = vadd.f32 %v1606_v29, %v1921_v57  ;;  %v915_v33 = vadd.f32 %v1606_v29, %v1923_v59 }
 0x11b   : > { %v890_v34 = vadd.f32 %v1607_v31, %v1921_v57  ;;  %v914_v35 = vadd.f32 %v1607_v31, %v1923_v59 }
 0x11c   : > { %899 = vst.msk [vmem:[#allocation5 + $0x38] sm:$0xff] %vm302_vm1, %v891_v32 }
 0x11d   : > { %898 = vst.msk [vmem:[#allocation5 + $0x30] sm:$0xff] %vm302_vm1, %v890_v34  ;;  %938 = vrot.lane.b32.xlu0 %v915_v33, %s1718_s6  ;;  %936 = vrot.lane.b32.xlu1 %v914_v35, %s1718_s6 }
 0x182   : > { %v927_v37 = vpop.permute.xlu1 %926 }
 0x183   : > { %949 = vst.msk [vmem:[#allocation6 + $0x8] sm:$0xff] %vm302_vm1, %v927_v37  ;;  %v925_v38 = vpop.permute.xlu0 %924 }
 0x184   : > { %948 = vst.msk [vmem:[#allocation6] sm:$0xff] %vm302_vm1, %v925_v38 }
 0x187   : > { %v931_v39 = vpop.permute.xlu0 %930  ;;  %v929_v40 = vpop.permute.xlu1 %928 }
 0x188   : > { %951 = vst.msk [vmem:[#allocation6 + $0x18] sm:$0xff] %vm302_vm1, %v931_v39  ;;  %950 = vst.msk [vmem:[#allocation6 + $0x10] sm:$0xff] %vm302_vm1, %v929_v40 }
 0x18a   : > { %959 = sbr.rel (%p1375_p9) target bundleno = 597 (0x255), region = 52 }
 0x18b   : > { %v935_v41 = vpop.permute.xlu0 %934  ;;  %v933_v42 = vpop.permute.xlu1 %932 }
 0x18c   : > { %953 = vst.msk [vmem:[#allocation6 + $0x28] sm:$0xff] %vm302_vm1, %v935_v41  ;;  %952 = vst.msk [vmem:[#allocation6 + $0x20] sm:$0xff] %vm302_vm1, %v933_v42 }
 0x18f   : > { %v939_v43 = vpop.permute.xlu0 %938  ;;  %v937_v44 = vpop.permute.xlu1 %936 }
 0x190   : > { %955 = vst.msk [vmem:[#allocation6 + $0x38] sm:$0xff] %vm302_vm1, %v939_v43  ;;  %954 = vst.msk [vmem:[#allocation6 + $0x30] sm:$0xff] %vm302_vm1, %v937_v44 }
 0x1d4   : > { %v1104_v25 = vpop.f32.mrb[0].mxu0 }
 0x1d5   : > { %v1555_v51 = vpop.f32.mrb[1].mxu0 }
 0x1dc   : > { %v1031_v49 = vpop.f32.mrb[0].mxu1 }
 0x1dd   : > { %v1105_v50 = vadd.f32 %v1104_v25, %v1031_v49  ;;  %v1544_v16 = vpop.f32.mrb[1].mxu1 }
 0x1df   : > { %v1108_v52 = vadd.f32 %v1921_v57, %v1105_v50  ;;  %v1110_v53 = vadd.f32 %v1105_v50, %v1923_v59 }
 0x1e1   : > { %1109 = vst.msk [vmem:[#allocation5] sm:$0xff] %vm302_vm1, %v1108_v52  ;;  %1112 = vrot.lane.b32.xlu0 %v1110_v53, %s1722_s8 }
 0x253   : > { %v1113_v21 = vpop.permute.xlu0 %1112 }
 0x254   : > { %1115 = vst.msk [vmem:[#allocation6] sm:$0xff] %vm302_vm1, %v1113_v21 }
 0x255 PF: > { %v1116_v36 = vld [vmem:[#allocation2] sm:$0xff]   ;;  %s1978_s9 = smov 0  }
 0x256 LB: >> { %s1985_s10 = sshll.u32 %s1714_s9, 3  ;;  %s1122_s9 = sadd.s32 1, %s1714_s9   ;;  %s1714_s9 = sphi %s1978_s9, %s1122_s9   ;;  %v1710_v36 = vphi %v1116_v36, %v2036_v36  }
 0x257   : >> { %s1125_s11 = scalar_lea.vmem [#allocation3], %s1985_s10  ;;  %s1127_s12 = scalar_lea.vmem [#allocation4], %s1985_s10 }
 0x258   : >> { %v1126_v54 = vld [vmem:[%s1125_s11] sm:$0xff]  ;;  %v1380_v56 = vld [vmem:[%s1125_s11 + $0x8] sm:$0xff]  ;;  %v1384_v57 = vld [vmem:[%s1125_s11 + $0x10] sm:$0xff]  ;;  %s1179_s13 = scalar_lea.vmem [#allocation6], %s1985_s10  ;;  %s1189_s14 = scalar_lea.vmem [#allocation5], %s1985_s10 }
 0x259   : >> { %v1139_v55 = vmul.f32 %v1710_v36, %v1126_v54  ;;  %v1144_v59 = vmul.f32 %v1710_v36, %v1380_v56  ;;  %v1149_v60 = vmul.f32 %v1710_v36, %v1384_v57  ;;  %v1128_v18 = vld [vmem:[%s1127_s12] sm:$0xff]  ;;  %v1382_v19 = vld [vmem:[%s1127_s12 + $0x8] sm:$0xff]  ;;  %v1386_v24 = vld [vmem:[%s1127_s12 + $0x10] sm:$0xff]  ;;  %s1193_s15 = scalar_lea.vmem %s1783_s7, %s1985_s10  ;;  %p1119_p10 = scmp.ge.s32.totalorder %s1122_s9, 8  }
 0x25a   : >> { %v1190_v44 = vld [vmem:[%s1189_s14] sm:$0xff]  ;;  %p1388_p11 = scmp.ge.s32.totalorder (%p1119_p10), %s1698_s18, 1 }
 0x25b   : >> { %v1140_v58 = vsel %vm302_vm1, %v1139_v55, 0.0  ;;  %v1145_v61 = vsel %vm302_vm1, %v1144_v59, 0.0  ;;  %v1150_v62 = vsel %vm302_vm1, %v1149_v60, 0.0  ;;  %v1180_v30 = vld [vmem:[%s1179_s13] sm:$0xff] }
 0x25c   : >> { %1141 = vadd.xlane.f32.xlu0 %v1140_v58  ;;  %1151 = vadd.xlane.f32.xlu1 %v1150_v62 }
 0x260   : >> { %1146 = vadd.xlane.f32.xlu0 %v1145_v61 }
 0x2e9   : >> { %v1142_v63 = vpop.xlane.xlu0 %1141  ;;  %v1152_v0 = vpop.xlane.xlu1 %1151 }
 0x2ea   : >> { %v1143_v2 = vmul.f32 0.17677669, %v1142_v63  ;;  %v1153_v4 = vmul.f32 0.17677669, %v1152_v0 }
 0x2ed   : >> { %v1147_v1 = vpop.xlane.xlu0 %1146 }
 0x2ee   : >> { %v1148_v3 = vmul.f32 0.17677669, %v1147_v1 }
 0x2f0   : >> { %v1154_v5 = vmax.f32 %v1143_v2, %v1148_v3 }
 0x2f2   : >> { %v1155_v6 = vmax.f32 %v1154_v5, %v1153_v4 }
 0x2f4   : >> { %v1156_v7 = vsub.f32 %v1143_v2, %v1155_v6  ;;  %v1159_v8 = vsub.f32 %v1148_v3, %v1155_v6  ;;  %v1162_v9 = vsub.f32 %v1153_v4, %v1155_v6 }
 0x2f6   : >> { %v1157_v10 = vmul.f32 1.442695, %v1156_v7  ;;  %v1160_v11 = vmul.f32 1.442695, %v1159_v8  ;;  %v1163_v12 = vmul.f32 1.442695, %v1162_v9 }
 0x2f8   : >> { %1664 = vpow2.f32 %v1157_v10 }
 0x2f9   : >> { %1666 = vpow2.f32 %v1160_v11 }
 0x2fa   : >> { %1668 = vpow2.f32 %v1163_v12 }
 0x302   : >> { %v1665_v13 = vpop.eup %1664 }
 0x303   : >> { %v1667_v14 = vpop.eup %1666  ;;  %v1169_v22 = vmul.f32 %v1665_v13, %v1128_v18  ;;  %v1168_v37 = vmul.f32 %v1665_v13, %v1126_v54 }
 0x304   : >> { %v1165_v15 = vadd.f32 %v1667_v14, %v1665_v13  ;;  %v1669_v17 = vpop.eup %1668  ;;  %v1172_v23 = vmul.f32 %v1667_v14, %v1382_v19  ;;  %v1170_v38 = vmul.f32 %v1667_v14, %v1380_v56 }
 0x305   : >> { %v1176_v27 = vmul.f32 %v1669_v17, %v1386_v24  ;;  %v1174_v40 = vmul.f32 %v1669_v17, %v1384_v57 }
 0x306   : >> { %v1166_v20 = vadd.f32 %v1669_v17, %v1165_v15  ;;  %v1173_v26 = vadd.f32 %v1172_v23, %v1169_v22  ;;  %v1171_v39 = vadd.f32 %v1170_v38, %v1168_v37 }
 0x308   : >> { %1670 = vrcp.f32 %v1166_v20  ;;  %v1177_v28 = vadd.f32 %v1176_v27, %v1173_v26  ;;  %v1175_v41 = vadd.f32 %v1174_v40, %v1171_v39 }
 0x312   : >> { %v1671_v29 = vpop.eup %1670 }
 0x313   : >> { %v1181_v31 = vmul.f32 %v1671_v29, %v1177_v28  ;;  %v1178_v42 = vmul.f32 %v1671_v29, %v1175_v41 }
 0x315   : >> { %v1182_v32 = vadd.f32 %v1181_v31, %v1180_v30 }
 0x317   : >> { %v1387_v33 = vmul.f32 -1.442695, %v1182_v32 }
 0x319   : >> { %1672 = vpow2.f32 %v1387_v33 }
 0x323   : >> { %v1673_v34 = vpop.eup %1672 }
 0x324   : >> { %v1186_v35 = vadd.f32 1.0, %v1673_v34 }
 0x326   : >> { %1674 = vrcp.f32 %v1186_v35 }
 0x32f   : > { %1121 = sbr.rel (!%p1119_p10) target bundleno = 598 (0x256), region = 102 }
 0x330   : >> { %v1675_v43 = vpop.eup %1674 }
 0x331   : >> { %v1191_v45 = vmul.f32 %v1675_v43, %v1178_v42 }
 0x333   : >> { %v1192_v46 = vadd.f32 %v1191_v45, %v1190_v44  }
 0x335   : >> { %1194 = vst.msk [vmem:[%s1193_s15] sm:$0xff] %vm302_vm1, %v1192_v46  ;;  %v2036_v36 = vmov %v1192_v46  ;;  %1195 = vst.msk [vmem:[#allocation2] sm:$0xff] (%p1119_p10), %vm302_vm1, %v1192_v46 }
 0x336   : > { %1199 = sbr.rel (%p1388_p11) target bundleno = 829 (0x33d), region = 63  ;;  %v1200_v47 = vld [vmem:[#allocation3 + $0x40] sm:$0xff] (!%p1388_p11)  ;;  %v1202_v48 = vld [vmem:[%s1778_s27] sm:$0xff] (!%p1388_p11)  ;;  %v1204_v25 = vld [vmem:[%s1778_s27 + $0x10] sm:$0xff] (!%p1388_p11) }
 0x337   : > { %v1203_v49 = vld [vmem:[%s1778_s27 + $0x8] sm:$0xff] (!%p1388_p11)  ;;  %1201 = vst.msk [vmem:[#allocation3] sm:$0xff] (!%p1388_p11), %vm302_vm1, %v1200_v47  ;;  %1210 = vst.msk [vmem:[#allocation3 + $0x8] sm:$0xff] (!%p1388_p11), %vm302_vm1, %v1202_v48  ;;  %v1205_v50 = vld [vmem:[%s1778_s27 + $0x18] sm:$0xff] (!%p1388_p11) }
 0x338   : > { %1211 = vst.msk [vmem:[#allocation3 + $0x10] sm:$0xff] (!%p1388_p11), %vm302_vm1, %v1203_v49  ;;  %v1206_v16 = vld [vmem:[%s1778_s27 + $0x20] sm:$0xff] (!%p1388_p11)  ;;  %1212 = vst.msk [vmem:[#allocation3 + $0x18] sm:$0xff] (!%p1388_p11), %vm302_vm1, %v1204_v25  ;;  %v1207_v51 = vld [vmem:[%s1778_s27 + $0x28] sm:$0xff] (!%p1388_p11) }
 0x339   : > { %1213 = vst.msk [vmem:[#allocation3 + $0x20] sm:$0xff] (!%p1388_p11), %vm302_vm1, %v1205_v50  ;;  %1214 = vst.msk [vmem:[#allocation3 + $0x28] sm:$0xff] (!%p1388_p11), %vm302_vm1, %v1206_v16  ;;  %v1208_v52 = vld [vmem:[%s1778_s27 + $0x30] sm:$0xff] (!%p1388_p11)  ;;  %v1209_v53 = vld [vmem:[%s1778_s27 + $0x38] sm:$0xff] (!%p1388_p11) }
 0x33a   : > { %1215 = vst.msk [vmem:[#allocation3 + $0x30] sm:$0xff] (!%p1388_p11), %vm302_vm1, %v1207_v51  ;;  %1216 = vst.msk [vmem:[#allocation3 + $0x38] sm:$0xff] (!%p1388_p11), %vm302_vm1, %v1208_v52 }
 0x33b   : > { %1217 = vst.msk [vmem:[#allocation3 + $0x40] sm:$0xff] (!%p1388_p11), %vm302_vm1, %v1209_v53 }
 0x33d PF: > { %s15_s20 = sadd.s32 1, %s1706_s20   ;;  %s2037_s18 = smov %s1702_s19 }
 0x33e   : > { %p12_p12 = scmp.ge.s32.totalorder %s15_s20, 4   ;;  %s2038_s19 = smov %s2040_s21 }
 0x340   :  { %14 = sbr.rel (!%p12_p12) target bundleno = 2 (0x2), region = 113 }

</bundles_post_ra>
